<compile_context>
chip_gen: v6e
topology: v6e:2x2x1
jax: 0.10.0
libtpu: 0.0.40
codegen_flags: <defaults>
</compile_context>

<pallas_src>
import functools

import jax
import jax.numpy as jnp
from jax.experimental import pallas as pl
from jax.experimental.pallas import tpu as pltpu

HIDDEN = 150     # width of the heads' input (forward applies heads to `state`)
N_PAD = 128      # fused (mu | sigma) head output padded to one lane tile
_SUBLANE = 8


def _round_up(x: int, m: int) -> int:
    return ((x + m - 1) // m) * m


def _fused_head_kernel(x_ref, w_ref, b_ref, out_ref, *, act):
    """One MXU pass for both heads + shared-exp activation epilogue."""
    # (tb, 150) @ (150, 128): K == full array extent, no K padding anywhere.
    z = jnp.dot(x_ref[...], w_ref[...], preferred_element_type=jnp.float32)
    z = z + b_ref[...]                                   # resident (1,128) bias

    # column <  act        -> mu    = sigmoid(z)  = 1 / (1 + exp(-z))
    # act <= column < 2act -> sigma = softplus(z) (torch threshold-20)
    # columns >= 2act are zero padding, sliced off in the wrapper.
    col = jax.lax.broadcasted_iota(jnp.int32, z.shape, 1)
    is_mu = col < act
    arg = jnp.where(is_mu, -z, jnp.minimum(z, 20.0))
    e = jnp.exp(arg)                                     # one EUP exp, all lanes
    mu = pl.reciprocal(1.0 + e, approx=True)             # EUP vrcp (approx)
    sp = jnp.where(z > 20.0, z, jnp.log1p(e))            # softplus, threshold 20
    out_ref[...] = jnp.where(is_mu, mu, sp)


def pack_actor_params(params, dtype=jnp.float32):
    """Fuse mu/sigma heads into one lane-tile-wide weight/bias (done once).

    Weights stay un-padded along K (150): the kernel contracts over the full
    extent.  Pass dtype=jnp.bfloat16 on v6e/v7x if the producer emits bf16
    states (halves HBM bytes on the dominant operand); f32 otherwise.
    """
    wmu, wsg = params["wmu"], params["wsg"]      # (150, act) each, [in, out]
    bmu, bsg = params["bmu"], params["bsg"]      # (1, act)
    act = wmu.shape[1]
    assert wmu.shape[0] == HIDDEN and wsg.shape[0] == HIDDEN
    assert 2 * act <= N_PAD, "action_space too large for single-lane-tile fusion"

    w = jnp.concatenate([wmu, wsg], axis=1)                       # (150, 2*act)
    b = jnp.concatenate([bmu, bsg], axis=1)                       # (1,   2*act)
    w = jnp.pad(w, ((0, 0), (0, N_PAD - 2 * act))).astype(dtype)
    b = jnp.pad(b, ((0, 0), (0, N_PAD - 2 * act))).astype(jnp.float32)
    return w, b, act


@functools.partial(jax.jit, static_argnames=("act", "block_b"))
def gaussian_actor_forward(state, w_fused, b_fused, *, act, block_b=1024):
    """state: (B, 150); w_fused: (150, 128); b_fused: (1, 128) f32."""
    B, obs = state.shape
    if obs != HIDDEN:
        raise ValueError(
            f"GaussianActor_musigma.forward applies the heads to `state` "
            f"directly; obs_space must equal {HIDDEN}, got {obs}")

    # Batch tile: as large as possible (>=512 hits ~85% of HBM roofline), but
    # capped near ceil(B/2) when one block would cover the batch so the
    # 'parallel' grid axis has >=2 steps and both v7x TensorCores get work.
    tb = min(block_b, _round_up(B, _SUBLANE))
    if B <= 2 * block_b:
        tb = min(tb, max(_SUBLANE, _round_up(pl.cdiv(B, 2), _SUBLANE)))
    grid = (pl.cdiv(B, tb),)

    itemsize = jnp.dtype(state.dtype).itemsize
    cost = pl.CostEstimate(
        flops=2 * B * HIDDEN * N_PAD,
        transcendentals=2 * B * N_PAD,
        bytes_accessed=(B * HIDDEN * itemsize + B * N_PAD * 4
                        + w_fused.size * jnp.dtype(w_fused.dtype).itemsize
                        + b_fused.size * 4),
    )

    out = pl.pallas_call(
        functools.partial(_fused_head_kernel, act=act),
        out_shape=jax.ShapeDtypeStruct((B, N_PAD), jnp.float32),
        grid=grid,
        in_specs=[
            pl.BlockSpec((tb, HIDDEN), lambda i: (i, 0)),     # state tile (ragged tail OK)
            pl.BlockSpec((HIDDEN, N_PAD), lambda i: (0, 0)),  # fused W, VMEM-resident
            pl.BlockSpec((1, N_PAD), lambda i: (0, 0)),       # fused bias, resident
        ],
        out_specs=pl.BlockSpec((tb, N_PAD), lambda i: (i, 0)),
        compiler_params=pltpu.CompilerParams(
            dimension_semantics=("parallel",)),
        cost_estimate=cost,
    )(state, w_fused, b_fused)

    mu = out[:, :act]
    sigma = out[:, act:2 * act]
    return mu, sigma


def init_params(key, obs_space, action_space, hidden=HIDDEN):
    """Deterministic init mimicking torch.nn.Linear (uniform +-1/sqrt(fan_in)).
    Weights are stored already transposed to [in, out]."""
    ks = jax.random.split(key, 8)

    def lin(kw, kb, fan_in, fan_out):
        bound = 1.0 / jnp.sqrt(jnp.float32(fan_in))
        w = jax.random.uniform(kw, (fan_in, fan_out), jnp.float32, -bound, bound)
        b = jax.random.uniform(kb, (1, fan_out), jnp.float32, -bound, bound)
        return w, b

    # l1 / l2 exist in the module but never feed the returned (mu, sigma);
    # initialized for parameter fidelity, never computed in the kernel.
    w1, b1 = lin(ks[0], ks[1], obs_space, hidden)
    w2, b2 = lin(ks[2], ks[3], hidden, hidden)
    wmu, bmu = lin(ks[4], ks[5], hidden, action_space)
    wsg, bsg = lin(ks[6], ks[7], hidden, action_space)
    return dict(w1=w1, b1=b1, w2=w2, b2=b2,
                wmu=wmu, bmu=bmu, wsg=wsg, bsg=bsg)


def _reference_forward(state, p):
    mu = jax.nn.sigmoid(state @ p["wmu"] + p["bmu"])
    sigma = jax.nn.softplus(state @ p["wsg"] + p["bsg"])
    return mu, sigma


if __name__ == "__main__":
    # obs_space must equal 150 for the original module's forward to be valid.
    # B=12 exercises a 2-step grid with a ragged (unpadded) last batch block.
    B, OBS, ACT = 12, 150, 6

    key = jax.random.PRNGKey(0)
    k_state, k_params = jax.random.split(key)
    state = jax.random.normal(k_state, (B, OBS), jnp.float32)
    params = init_params(k_params, OBS, ACT)

    # One-time packing of the fused head weights/bias.
    w_fused, b_fused, act = pack_actor_params(params)

    mu, sigma = gaussian_actor_forward(state, w_fused, b_fused, act=act)
    jax.block_until_ready((mu, sigma))

    mu_ref, sigma_ref = _reference_forward(state, params)
    assert mu.shape == (B, ACT) and sigma.shape == (B, ACT)
    # sigma path is exact (shared exp + log1p); mu uses the EUP approximate
    # reciprocal (perf-review item), trading <~1e-3 abs error for throughput.
    assert jnp.allclose(sigma, sigma_ref, atol=1e-5, rtol=1e-5), "sigma mismatch"
    assert jnp.allclose(mu, mu_ref, atol=5e-3, rtol=5e-3), "mu mismatch"
    assert bool(jnp.all(sigma > 0.0))

    print("KERNEL_OK")
</pallas_src>

<mosaic_0001>
module attributes {stable_mosaic.version = 11 : i64} {
  func.func @_fused_head_kernel(%arg0: i32, %arg1: memref<8x150xf32, #tpu.memory_space<vmem>>, %arg2: memref<150x128xf32, #tpu.memory_space<vmem>>, %arg3: memref<1x128xf32, #tpu.memory_space<vmem>>, %arg4: memref<8x128xf32, #tpu.memory_space<vmem>>) attributes {dimension_semantics = [#tpu.dimension_semantics<parallel>], iteration_bounds = array<i64: 2>, scalar_prefetch = 0 : i64, scratch_operands = 0 : i64, tpu.core_type = #tpu.core_type<tc>, window_params = [{transform_indices = @transform_0, window_bounds = array<i64: 8, 150>}, {pipeline_mode = #tpu.pipeline_mode<synchronous>, transform_indices = @transform_1, window_bounds = array<i64: 150, 128>}, {pipeline_mode = #tpu.pipeline_mode<synchronous>, transform_indices = @transform_2, window_bounds = array<i64: 1, 128>}, {transform_indices = @transform_3, window_bounds = array<i64: 8, 128>}]} {
    %c0 = arith.constant 0 : index
    %c0_0 = arith.constant 0 : index
    %0 = vector.load %arg1[%c0, %c0_0] : memref<8x150xf32, #tpu.memory_space<vmem>>, vector<8x150xf32>
    %c0_1 = arith.constant 0 : index
    %c0_2 = arith.constant 0 : index
    %1 = vector.load %arg2[%c0_1, %c0_2] : memref<150x128xf32, #tpu.memory_space<vmem>>, vector<150x128xf32>
    %cst = arith.constant dense<0.000000e+00> : vector<8x128xf32>
    %2 = tpu.matmul %0, %1, %cst {dimension_numbers = #tpu.dot_dimension_numbers<[1], [0], [0], [1], [0, 0, 1, 1], [], []>} : vector<8x150xf32>, vector<150x128xf32>, vector<8x128xf32> -> vector<8x128xf32>
    %c0_3 = arith.constant 0 : index
    %c0_4 = arith.constant 0 : index
    %3 = vector.load %arg3[%c0_3, %c0_4] : memref<1x128xf32, #tpu.memory_space<vmem>>, vector<1x128xf32>
    %4 = vector.broadcast %3 : vector<1x128xf32> to vector<8x128xf32>
    %5 = arith.addf %2, %4 : vector<8x128xf32>
    %6 = tpu.iota {dimensions = array<i32: 1>} : vector<8x128xi32>
    %c6_i32 = arith.constant 6 : i32
    %7 = vector.broadcast %c6_i32 : i32 to vector<8x128xi32>
    %8 = arith.cmpi slt, %6, %7 : vector<8x128xi32>
    %cst_5 = arith.constant 0.000000e+00 : f32
    %9 = vector.broadcast %cst_5 : f32 to vector<8x128xf32>
    %10 = arith.subf %9, %5 : vector<8x128xf32>
    %cst_6 = arith.constant 2.000000e+01 : f32
    %11 = vector.broadcast %cst_6 : f32 to vector<8x128xf32>
    %12 = arith.minimumf %5, %11 : vector<8x128xf32>
    %13 = arith.select %8, %10, %12 : vector<8x128xi1>, vector<8x128xf32>
    %14 = math.exp %13 : vector<8x128xf32>
    %cst_7 = arith.constant 1.000000e+00 : f32
    %15 = vector.broadcast %cst_7 : f32 to vector<8x128xf32>
    %16 = arith.addf %15, %14 : vector<8x128xf32>
    %17 = tpu.reciprocal %16 {approx = true} : vector<8x128xf32> -> vector<8x128xf32>
    %cst_8 = arith.constant 2.000000e+01 : f32
    %18 = vector.broadcast %cst_8 : f32 to vector<8x128xf32>
    %19 = arith.cmpf ogt, %5, %18 : vector<8x128xf32>
    %20 = math.log1p %14 : vector<8x128xf32>
    %21 = arith.select %19, %5, %20 : vector<8x128xi1>, vector<8x128xf32>
    %22 = arith.select %8, %17, %21 : vector<8x128xi1>, vector<8x128xf32>
    %c0_9 = arith.constant 0 : index
    %c0_10 = arith.constant 0 : index
    %23 = vector.load %arg4[%c0_9, %c0_10] : memref<8x128xf32, #tpu.memory_space<vmem>>, vector<8x128xf32>
    tpu.vector_store %arg4[%c0_9, %c0_10], %22 {strides = array<i32>} : memref<8x128xf32, #tpu.memory_space<vmem>>, vector<8x128xf32>,
    return
  }
  func.func @transform_0(%arg0: i32) -> (i32, i32) {
    %c0_i32 = arith.constant 0 : i32
    %c0_i32_0 = arith.constant 0 : i32
    return %arg0, %c0_i32 : i32, i32
  }
  func.func @transform_1(%arg0: i32) -> (i32, i32) {
    %c0_i32 = arith.constant 0 : i32
    %c0_i32_0 = arith.constant 0 : i32
    %c0_i32_1 = arith.constant 0 : i32
    return %c0_i32, %c0_i32_0 : i32, i32
  }
  func.func @transform_2(%arg0: i32) -> (i32, i32) {
    %c0_i32 = arith.constant 0 : i32
    %c0_i32_0 = arith.constant 0 : i32
    %c0_i32_1 = arith.constant 0 : i32
    return %c0_i32, %c0_i32_0 : i32, i32
  }
  func.func @transform_3(%arg0: i32) -> (i32, i32) {
    %c0_i32 = arith.constant 0 : i32
    %c0_i32_0 = arith.constant 0 : i32
    return %arg0, %c0_i32 : i32, i32
  }
}

</mosaic_0001>

<bundles_post_ra>
// kernel: gaussian_actor_forward.1
= control target key start
LH: loop header
LB: loop body
LE: loop exit
PB: predicated region body
PF: predicated region fallthrough
CT: control target
= control target key end

     0   :  { %8 = vsyncpa [#allocation3], 0  ;;  %s730_s0 = inlined_call_operand.hbm [shape: f32[12,150], index: 0, kind: input, shape index: {}]   ;;  %s731_s1 = inlined_call_operand.hbm [shape: f32[150,128], index: 1, kind: input, shape index: {}]   ;;  %s732_s2 = inlined_call_operand.vmem [shape: f32[1,128], index: 2, kind: input, shape index: {}]   ;;  %s733_s3 = inlined_call_operand.vmem [shape: f32[12,128], index: 3, kind: output, shape index: {}]  }
   0x1   :  { %10 = vsyncpa [#allocation3 + $0x1], 0 }
   0x2   :  { %11 = vsyncpa [#allocation5], 0  ;;  %s601_s12 = smov 0   ;;  %s603_s13 = smov 0  }
   0x3   :  { %s605_s14 = smov 0   ;;  %s607_s15 = smov 0  }
   0x4 LB: > { %s620_s16 = sadd.s32 4294967295, %s574_s15   ;;  %p37_p0 = scmp.ne.s32.totalorder %s566_s13, %s562_s12  ;;  %s574_s15 = sphi %s607_s15, %s748_s15   ;;  %s570_s14 = sphi %s605_s14, %s747_s14   ;;  %s566_s13 = sphi %s603_s13, %s746_s13   ;;  %s562_s12 = sphi %s601_s12, %s745_s12  }
   0x5   : > { %p734_p1 = scmp.eq.s32.totalorder %s620_s16, 0  ;;  %p407_p2 = scmp.ge.s32.totalorder %s574_s15, 1 }
   0x6   : > { %p116_p3 = scmp.lt.s32.totalorder %s574_s15, 3  ;;  %s576_s19 = smov [#allocation4]  }
   0x7   : > { %p628_p4 = por %p734_p1, %p37_p0  ;;  %s128_s20 = sshll.u32 %s576_s19, 4  ;;  %s129_s20 = int_to_ptr.vmem [resolvable:$true] %s128_s20 }
   0x8   : > { %p632_p5 = pnand %p407_p2, %p116_p3  ;;  %s645_s22 = sadd.s32 1, %s574_s15  }
   0x9   : > { %s737_s17 = scalar_select %p628_p4, 1, 0 }
   0xa   : > { %s738_s18 = scalar_select %p632_p5, 1, 0 }
   0xb   : > { %p429_p6 = pneg %p632_p5  ;;  %s24_s23 = sadd.s32 1, %s570_s14 }
   0xc   : > { %s21_s24 = ssub.s32 %s574_s15, %s645_s22  ;;  %s493_s25 = scalar_lea.vmem %s129_s20, 2432 }
   0xd   : > { %p640_p7 = pnand %p429_p6, %p734_p1  ;;  %p494_p9 = scmp.ne.s32.totalorder %s129_s20, %s493_s25 }
   0xe   : > { %p501_p12 = scmp.lt.s32.totalorder %s129_s20, %s129_s20  ;;  %p502_p13 = scmp.lt.s32.totalorder %s493_s25, %s493_s25 }
   0xf   : > { %p484_p8 = pneg %p640_p7 }
  0x10   : > { %p503_p0 = por %p502_p13, %p501_p12 }
  0x11   : > { %p496_p10 = pnand %p494_p9, %p484_p8 }
  0x13   : > { %p497_p11 = pneg %p496_p10 }
  0x15   : > { %p504_p2 = pnand %p503_p0, %p497_p11 }
  0x17   : > { %507 = shalt.err (!%p504_p2)
}
  0x18   : > { %s577_s26 = smov 128   ;;  %s578_s27 = smov 8  }
  0x19   : > { %432 = dma.hbm_to_vmem [thread:$0]  (!%p640_p7), %s731_s1, 2432, %s129_s20, [#allocation5], %s577_s26, %s577_s26, %s578_s27  }
  0x1a   : > { %p22_p3 = scmp.eq.s32.totalorder %s21_s24, 0  ;;  %p31_p6 = scmp.ne.s32.totalorder %s570_s14, %s566_s13 }
  0x1b   : > { %p32_p8 = scmp.eq.s32.totalorder %s574_s15, 0  ;;  %p438_p9 = scmp.lt.s32.totalorder %s574_s15, 2 }
  0x1c   : > { %s662_s30 = scalar_select %p22_p3, %s570_s14, %s24_s23  }
  0x1d   : > { %p33_p10 = por %p32_p8, %p31_p6  ;;  %s145_s4 = sand.u32 1, %s570_s14  }
  0x1e   : > { %s410_s5 = sshll.u32 %s145_s4, 4  ;;  %s422_s6 = sshll.u32 %s574_s15, 8 }
  0x1f   : > { %s669_s9 = scalar_lea.hbm %s730_s0, %s422_s6  ;;  %s149_s10 = scalar_lea.vmem [#allocation2], %s410_s5 }
  0x20   : > { %s157_s11 = sshll.u32 %s149_s10, 4  ;;  %p671_p7 = pnand %p438_p9, %p33_p10  ;;  %s158_s11 = int_to_ptr.vmem [resolvable:$true] %s157_s11 }
  0x21   : > { %s146_s19 = scalar_lea.sflag [#allocation3], %s145_s4  ;;  %s508_s20 = scalar_lea.hbm %s669_s9, 256 }
  0x22   : > { %p509_p11 = scmp.ne.s32.totalorder %s669_s9, %s508_s20  ;;  %p510_p12 = pneg %p671_p7 }
  0x23   : > { %s513_s23 = scalar_lea.hbm %s730_s0, 512  ;;  %p514_p2 = scmp.lt.s32.totalorder %s669_s9, %s730_s0 }
  0x24   : > { %p511_p13 = pnand %p510_p12, %p509_p11  ;;  %p515_p3 = scmp.lt.s32.totalorder %s513_s23, %s508_s20 }
  0x26   : > { %p512_p0 = pneg %p511_p13  ;;  %p516_p6 = por %p515_p3, %p514_p2 }
  0x28   : > { %p517_p8 = pnand %p516_p6, %p512_p0 }
  0x2a   : > { %520 = shalt.err (!%p517_p8)
}
  0x2b   : > { %s521_s26 = scalar_lea.vmem %s158_s11, 256  ;;  %s579_s27 = smov [#allocation2]  }
  0x2c   : > { %p522_p9 = scmp.ne.s32.totalorder %s158_s11, %s521_s26  ;;  %s526_s28 = sshll.u32 %s579_s27, 4  ;;  %s527_s28 = int_to_ptr.vmem [resolvable:$false] %s526_s28 }
  0x2d   : > { %s528_s29 = scalar_lea.vmem %s527_s28, 512  ;;  %p529_p11 = scmp.lt.s32.totalorder %s158_s11, %s527_s28 }
  0x2e   : > { %p524_p10 = pnand %p522_p9, %p510_p12  ;;  %p530_p13 = scmp.lt.s32.totalorder %s528_s29, %s521_s26 }
  0x30   : > { %p525_p1 = pneg %p524_p10  ;;  %p531_p4 = por %p530_p13, %p529_p11 }
  0x32   : > { %p532_p5 = pnand %p531_p4, %p525_p1 }
  0x34   : > { %535 = shalt.err (!%p532_p5)
}
  0x35   : > { %436 = dma.hbm_to_vmem [thread:$0]  (!%p671_p7), %s669_s9, 256, %s158_s11, %s146_s19  }
  0x36   : > { %p741_p0 = scmp.ne.s32.totalorder %s738_s18, 0 }
  0x37   : > { %s168_s4 = sand.u32 (!%p741_p0), 1, %s566_s13   ;;  %p742_p12 = scmp.ne.s32.totalorder (!%p741_p0), %s737_s17, 0 }
  0x38   : > { %166 = sbr.rel (%p741_p0) target bundleno = 340 (0x154), region = 32  ;;  %s692_s5 = sshll.u32 (!%p741_p0), %s168_s4, 4 }
  0x39   : > { %s169_s6 = scalar_lea.sflag (!%p741_p0), [#allocation3], %s168_s4  ;;  %s172_s7 = scalar_lea.vmem (!%p741_p0), [#allocation2], %s692_s5 }
  0x3d   : > { %553 = dma.done.wait (%p742_p12), %s169_s6, 256  }
  0x3e   : > { %555 = vsyncadd (%p742_p12), %s169_s6, 4294967040  ;;  %p743_p1 = scmp.eq.s32.totalorder %s620_s16, 0 }
  0x40   : > { %557 = dma.done.wait (%p743_p1), [#allocation5], 2432   ;;  %p744_p4 = pmov %p743_p1 }
  0x41   : > { %v580_v0 = vmov 0.0   ;;  %v219_v1 = vld [vmem:[#allocation4 + $0x78] sm:$0xff]  ;;  %v218_v2 = vld [vmem:[#allocation4 + $0x70] sm:$0xff]  ;;  %v217_v3 = vld [vmem:[#allocation4 + $0x68] sm:$0xff]  ;;  %vm230_vm0 = vcmask 179200   ;;  %vm234_vm1 = vcmask 1045504   ;;  %v308_v22 = vlaneseq }
  0x42   : > { %559 = vsyncadd (%p744_p4), [#allocation5], 4294964864  ;;  %238 = vmatprep.subr.mxu0 %v580_v0  ;;  %v216_v4 = vld [vmem:[#allocation4 + $0x60] sm:$0xff]  ;;  %v215_v5 = vld [vmem:[#allocation4 + $0x58] sm:$0xff]  ;;  %p198_p5 = scmp.lt.s32.totalorder %s620_s16, 1 }
  0x43   : > { %239 = vmatpush1.msra.mxu0 %v219_v1  ;;  %v203_v6 = vld [vmem:[%s172_s7 + $0x8] sm:$0xff]  ;;  %v214_v7 = vld [vmem:[#allocation4 + $0x50] sm:$0xff]  ;;  %v212_v9 = vld [vmem:[#allocation4 + $0x40] sm:$0xff]  ;;  %v309_v24 = vand.u32 127, %v308_v22 }
  0x44   : > { %240 = vmatprep.subr.mxu0 %v580_v0  ;;  %419 = vmatprep.mubr.msk.f32.mxu0 %vm230_vm0, %v203_v6  ;;  %v213_v8 = vld [vmem:[#allocation4 + $0x48] sm:$0xff]  ;;  %v211_v10 = vld [vmem:[#allocation4 + $0x38] sm:$0xff]  ;;  %v210_v11 = vld [vmem:[#allocation4 + $0x30] sm:$0xff]  ;;  %s750_s16 = smov (!%p198_p5, %s620_s16), 1 }
  0x45   : > { %241 = vmatpush1.msra.mxu0 %v218_v2  ;;  %v209_v12 = vld [vmem:[#allocation4 + $0x28] sm:$0xff]  ;;  %v208_v13 = vld [vmem:[#allocation4 + $0x20] sm:$0xff]  ;;  %v207_v14 = vld [vmem:[#allocation4 + $0x18] sm:$0xff]  ;;  %vm310_vm2 = vcmp.lt.s32.totalorder %v309_v24, 6  ;;  %s416_s8 = sshll.u32 %s750_s16, 3 }
  0x46   : > { %242 = vmatprep.subr.mxu0 %v580_v0  ;;  %v206_v15 = vld [vmem:[#allocation4 + $0x10] sm:$0xff]  ;;  %v205_v16 = vld [vmem:[#allocation4 + $0x8] sm:$0xff]  ;;  %v204_v17 = vld [vmem:[#allocation4] sm:$0xff]  ;;  %s201_s11 = scalar_lea.vmem %s733_s3, %s416_s8 }
  0x47   : > { %243 = vmatpush1.msra.mxu0 %v217_v3  ;;  %v222_v18 = vld [vmem:[#allocation4 + $0x90] sm:$0x3f]  ;;  %v221_v19 = vld [vmem:[#allocation4 + $0x88] sm:$0xff]  ;;  %v220_v20 = vld [vmem:[#allocation4 + $0x80] sm:$0xff] }
  0x48   : > { %244 = vmatprep.subr.mxu0 %v580_v0  ;;  %v202_v21 = vld [vmem:[%s172_s7] sm:$0xff] }
  0x49   : > { %245 = vmatpush1.msra.mxu0 %v216_v4  ;;  %v417_v23 = vld [vmem:[%s732_s2] ss:$0 sm:$0xff] }
  0x4a   : > { %246 = vmatprep.subr.mxu0 %v580_v0 }
  0x4b   : > { %247 = vmatpush1.msra.mxu0 %v215_v5 }
  0x4c   : > { %248 = vmatprep.subr.mxu0 %v580_v0 }
  0x4d   : > { %249 = vmatpush1.msra.mxu0 %v214_v7 }
  0x4e   : > { %250 = vmatprep.subr.mxu0 %v580_v0 }
  0x4f   : > { %251 = vmatpush1.msra.mxu0 %v213_v8 }
  0x50   : > { %252 = vmatprep.subr.mxu0 %v580_v0 }
  0x51   : > { %253 = vmatpush1.msra.mxu0 %v212_v9 }
  0x52   : > { %254 = vmatprep.subr.mxu0 %v580_v0 }
  0x53   : > { %255 = vmatpush1.msra.mxu0 %v211_v10 }
  0x54   : > { %256 = vmatprep.subr.mxu0 %v580_v0 }
  0x55   : > { %257 = vmatpush1.msra.mxu0 %v210_v11 }
  0x56   : > { %258 = vmatprep.subr.mxu0 %v580_v0 }
  0x57   : > { %259 = vmatpush1.msra.mxu0 %v209_v12 }
  0x58   : > { %260 = vmatprep.subr.mxu0 %v580_v0 }
  0x59   : > { %261 = vmatpush1.msra.mxu0 %v208_v13 }
  0x5a   : > { %262 = vmatprep.subr.mxu0 %v580_v0 }
  0x5b   : > { %263 = vmatpush1.msra.mxu0 %v207_v14 }
  0x5c   : > { %264 = vmatprep.subr.mxu0 %v580_v0 }
  0x5d   : > { %265 = vmatpush1.msra.mxu0 %v206_v15 }
  0x5e   : > { %266 = vmatprep.subr.mxu0 %v580_v0 }
  0x5f   : > { %267 = vmatpush1.msra.mxu0 %v205_v16 }
  0x60   : > { %268 = vmatprep.subr.mxu0 %v580_v0 }
  0x61   : > { %269 = vmatpush1.msra.mxu0 %v204_v17 }
  0x62   : > { %296 = vmatprep.subr.mxu0 %v580_v0 }
  0x63   : > { %418 = vmatpush2.msk.msra.mxu0 %vm234_vm1, %v222_v18 }
  0x64   : > { %298 = vmatprep.subr.mxu0 %v580_v0 }
  0x65   : > { %299 = vmatpush2.msra.mxu0 %v221_v19 }
  0x66   : > { %300 = vmatprep.subr.mxu0 %v580_v0 }
  0x67   : > { %301 = vmatpush2.msra.mxu0 %v220_v20 }
  0x68   : > { %303 = vmatmul.mubr.f32.vlgmr.msra.gmra.mxu0 %v202_v21 }
 0x128   : > { %v304_v25 = vpop.f32.mrf.mxu0 }
 0x129   : > { %v305_v26 = vadd.f32 %v417_v23, %v304_v25 }
 0x12a   : > { %v306_v27 = vpop.f32.mrf.mxu0 }
 0x12b   : > { %v311_v28 = vsub.f32 0.0, %v305_v26  ;;  %v312_v29 = vmin.f32 %v305_v26, 20.0  ;;  %vm318_vm4 = vcmp.gt.f32.partialorder %v305_v26, 20.0 }
 0x12d   : > { %v313_v30 = vsel %vm310_vm2, %v311_v28, %v312_v29 }
 0x12e   : > { %v314_v31 = vmul.f32 1.442695, %v313_v30 }
 0x130   : > { %476 = vpow2.f32 %v314_v31 }
 0x13d   : > { %v477_v32 = vpop.eup %476 }
 0x13e   : > { %v316_v33 = vadd.f32 1.0, %v477_v32  ;;  %v322_v34 = vmul.f32 -0.5, %v477_v32  ;;  %v325_v36 = vand.u32 2147483647, %v477_v32 }
 0x140   : > { %478 = vlog2.f32 %v316_v33  ;;  %v323_v35 = vadd.f32 1.0, %v322_v34  ;;  %vm326_vm3 = vcmp.lt.f32.partialorder %v325_v36, 0.0004427343 }
 0x141   : > { %480 = vrcp.f32 %v316_v33 }
 0x142   : > { %v324_v39 = vmul.f32 %v477_v32, %v323_v35 }
 0x14d   : > { %v479_v37 = vpop.eup %478 }
 0x14e   : > { %v321_v38 = vmul.f32 0.6931472, %v479_v37  ;;  %v481_v41 = vpop.eup %480 }
 0x150   : > { %v327_v40 = vsel %vm326_vm3, %v324_v39, %v321_v38 }
 0x151   : > { %v328_v42 = vsel %vm318_vm4, %v305_v26, %v327_v40 }
 0x152   : > { %v329_v43 = vsel %vm310_vm2, %v481_v41, %v328_v42 }
 0x153   : > { %330 = vst [vmem:[%s201_s11] sm:$0xff] %v329_v43 }
 0x154 PF: > { %p14_p7 = scmp.ge.s32.totalorder %s645_s22, 4   ;;  %s745_s12 = smov %s566_s13 }
 0x155   : > { %s746_s13 = smov %s570_s14  ;;  %s747_s14 = smov %s662_s30 }
 0x156   : > { %s748_s15 = smov %s645_s22  ;;  %16 = sbr.rel (!%p14_p7) target bundleno = 4 (0x4), region = 76 }
 0x15b   :  { %350 = vsyncpa [#allocation3], 1 }
 0x15c   :  { %352 = vsyncpa [#allocation3 + $0x1], 1 }
 0x15d   :  { %353 = vsyncpa [#allocation5], 1 }

</bundles_post_ra>
